<compile_context>
chip_gen: v6e
topology: v6e:2x2x1
jax: 0.10.0
libtpu: 0.0.40
codegen_flags: <defaults>
</compile_context>

<pallas_src>
import jax
import jax.numpy as jnp
from jax.experimental import pallas as pl
from jax.experimental.pallas import tpu as pltpu


def _linear_kernel(xt_ref, w_ref, b_ref, o_ref):
    """y[o, b] = sum_f w[o, f] * x[f, b] + bias[o]   (VPU MAC, lane = batch).

    xt_ref: (F, B)  float32 VMEM   -- batch on the lane axis
    w_ref:  (O*F,)  float32 SMEM   -- flattened nn.Linear weight (row-major)
    b_ref:  (O,)    float32 SMEM
    o_ref:  (O, B)  float32 VMEM   -- lane-dense output
    """
    n_feat = xt_ref.shape[0]
    n_out = o_ref.shape[0]

    x = xt_ref[...]                                   # (F, B), single load

    for o in range(n_out):                            # static unroll (O == 1)
        # Fold the bias into the first MAC term.
        acc = x[0:1, :] * w_ref[o * n_feat + 0] + b_ref[o]
        for f in range(1, n_feat):                    # static unroll (F == 5)
            acc = acc + x[f:f + 1, :] * w_ref[o * n_feat + f]
        o_ref[pl.ds(o, 1), :] = acc.astype(o_ref.dtype)


def quality_predictor_forward(x, weight, bias):
    """y = x @ weight.T + bias   (matches nn.Linear semantics).

    x:      (B, in_features)             float32
    weight: (out_features, in_features)  float32  (PyTorch convention)
    bias:   (out_features,)              float32
    returns (B, out_features)            float32
    """
    B, F = x.shape
    O = weight.shape[0]

    x_t = jnp.transpose(x)            # (F, B): batch on the lane axis
    w_flat = weight.reshape(-1)       # (O*F,): free reshape, no transpose
    b_vec = bias.reshape(-1)          # (O,)

    y_t = pl.pallas_call(
        _linear_kernel,
        out_shape=jax.ShapeDtypeStruct((O, B), x.dtype),
        in_specs=[
            pl.BlockSpec(memory_space=pltpu.MemorySpace.VMEM),   # x (F, B)
            pl.BlockSpec(memory_space=pltpu.MemorySpace.SMEM),   # weight scalars
            pl.BlockSpec(memory_space=pltpu.MemorySpace.SMEM),   # bias scalar(s)
        ],
        out_specs=pl.BlockSpec(memory_space=pltpu.MemorySpace.VMEM),
    )(x_t, w_flat, b_vec)

    return jnp.transpose(y_t)         # (B, O); trivial since O == 1


if __name__ == "__main__":
    key = jax.random.PRNGKey(0)
    kx, kw, kb = jax.random.split(key, 3)

    batch = 8
    in_features = 5
    out_features = 1

    # Deterministic synthetic parameters (nn.Linear(5, 1) shapes).
    x = jax.random.normal(kx, (batch, in_features), dtype=jnp.float32)
    weight = jax.random.normal(kw, (out_features, in_features), dtype=jnp.float32) * 0.1
    bias = jax.random.normal(kb, (out_features,), dtype=jnp.float32) * 0.1

    y = quality_predictor_forward(x, weight, bias)
    y = jax.block_until_ready(y)

    # Pure-JAX reference check (nn.Linear: x @ W.T + b).
    y_ref = x @ weight.T + bias
    assert y.shape == (batch, out_features)
    assert jnp.allclose(y, y_ref, atol=1e-5, rtol=1e-5)

    print("KERNEL_OK")
</pallas_src>

<mosaic_0001>
module attributes {stable_mosaic.version = 11 : i64} {
  func.func @_linear_kernel(%arg0: memref<5x8xf32, #tpu.memory_space<vmem>>, %arg1: memref<5xf32, #tpu.memory_space<smem>>, %arg2: memref<1xf32, #tpu.memory_space<smem>>, %arg3: memref<1x8xf32, #tpu.memory_space<vmem>>) attributes {dimension_semantics = [], scalar_prefetch = 0 : i64, scratch_operands = 0 : i64, tpu.core_type = #tpu.core_type<tc>} {
    %c0 = arith.constant 0 : index
    %c0_0 = arith.constant 0 : index
    %0 = vector.load %arg0[%c0, %c0_0] : memref<5x8xf32, #tpu.memory_space<vmem>>, vector<5x8xf32>
    %1 = vector.extract_strided_slice %0 {offsets = [0, 0], sizes = [1, 8], strides = [1, 1]} : vector<5x8xf32> to vector<1x8xf32>
    %c0_1 = arith.constant 0 : index
    %2 = memref.load %arg1[%c0_1] : memref<5xf32, #tpu.memory_space<smem>>
    %3 = vector.broadcast %2 : f32 to vector<1x8xf32>
    %4 = arith.mulf %1, %3 : vector<1x8xf32>
    %c0_2 = arith.constant 0 : index
    %5 = memref.load %arg2[%c0_2] : memref<1xf32, #tpu.memory_space<smem>>
    %6 = vector.broadcast %5 : f32 to vector<1x8xf32>
    %7 = arith.addf %4, %6 : vector<1x8xf32>
    %8 = vector.extract_strided_slice %0 {offsets = [1, 0], sizes = [1, 8], strides = [1, 1]} : vector<5x8xf32> to vector<1x8xf32>
    %c1 = arith.constant 1 : index
    %9 = memref.load %arg1[%c1] : memref<5xf32, #tpu.memory_space<smem>>
    %10 = vector.broadcast %9 : f32 to vector<1x8xf32>
    %11 = arith.mulf %8, %10 : vector<1x8xf32>
    %12 = arith.addf %7, %11 : vector<1x8xf32>
    %13 = vector.extract_strided_slice %0 {offsets = [2, 0], sizes = [1, 8], strides = [1, 1]} : vector<5x8xf32> to vector<1x8xf32>
    %c2 = arith.constant 2 : index
    %14 = memref.load %arg1[%c2] : memref<5xf32, #tpu.memory_space<smem>>
    %15 = vector.broadcast %14 : f32 to vector<1x8xf32>
    %16 = arith.mulf %13, %15 : vector<1x8xf32>
    %17 = arith.addf %12, %16 : vector<1x8xf32>
    %18 = vector.extract_strided_slice %0 {offsets = [3, 0], sizes = [1, 8], strides = [1, 1]} : vector<5x8xf32> to vector<1x8xf32>
    %c3 = arith.constant 3 : index
    %19 = memref.load %arg1[%c3] : memref<5xf32, #tpu.memory_space<smem>>
    %20 = vector.broadcast %19 : f32 to vector<1x8xf32>
    %21 = arith.mulf %18, %20 : vector<1x8xf32>
    %22 = arith.addf %17, %21 : vector<1x8xf32>
    %23 = vector.extract_strided_slice %0 {offsets = [4, 0], sizes = [1, 8], strides = [1, 1]} : vector<5x8xf32> to vector<1x8xf32>
    %c4 = arith.constant 4 : index
    %24 = memref.load %arg1[%c4] : memref<5xf32, #tpu.memory_space<smem>>
    %25 = vector.broadcast %24 : f32 to vector<1x8xf32>
    %26 = arith.mulf %23, %25 : vector<1x8xf32>
    %27 = arith.addf %22, %26 : vector<1x8xf32>
    %c0_3 = arith.constant 0 : index
    %c0_4 = arith.constant 0 : index
    %28 = vector.load %arg3[%c0_3, %c0_4] : memref<1x8xf32, #tpu.memory_space<vmem>>, vector<1x8xf32>
    tpu.vector_store %arg3[%c0_3, %c0_4], %27 {strides = array<i32>} : memref<1x8xf32, #tpu.memory_space<vmem>>, vector<1x8xf32>,
    return
  }
}

</mosaic_0001>

<bundles_post_ra>
// kernel: tpu_custom_call.1
= control target key start
LH: loop header
LB: loop body
LE: loop exit
PB: predicated region body
PF: predicated region fallthrough
CT: control target
= control target key end

     0   :  { %9 = vsyncpa [#allocation4], 0  ;;  %s194_s0 = inlined_call_operand.hbm [shape: f32[5,8], index: 0, kind: input, shape index: {}]   ;;  %s195_s1 = inlined_call_operand.vmem [shape: f32[5], index: 1, kind: input, shape index: {}]   ;;  %s196_s2 = inlined_call_operand.<no memory space> [shape: f32[1], index: 2, kind: input, shape index: {}]   ;;  %s197_s3 = inlined_call_operand.hbm [shape: f32[1,8], index: 3, kind: output, shape index: {}]  }
   0x1   :  { %10 = vsyncpa [#allocation6], 0 }
   0x2   :  { %11 = vsyncpa [#allocation5], 0  ;;  %s28_s14 = sshll.u32 %s195_s1, 4  ;;  %s159_s15 = smov [#allocation3]   ;;  %s29_s14 = int_to_ptr.vmem [resolvable:$true] %s28_s14 }
   0x3   :  { %s18_s16 = sshll.u32 %s159_s15, 4  ;;  %s19_s16 = int_to_ptr.vmem [resolvable:$true] %s18_s16 }
   0x4   :  { %s109_s17 = scalar_lea.vmem %s19_s16, 128  ;;  %p114_p1 = scmp.lt.s32.totalorder %s19_s16, %s19_s16 }
   0x5   :  { %p110_p0 = scmp.ne.s32.totalorder %s19_s16, %s109_s17  ;;  %p115_p2 = scmp.lt.s32.totalorder %s109_s17, %s109_s17 }
   0x7   :  { %p116_p3 = por %p115_p2, %p114_p1 }
   0x9   :  { %p117_p4 = pnand %p116_p3, %p110_p0 }
   0xb   :  { %120 = shalt.err (!%p117_p4)
}
   0xc   :  { %21 = dma.hbm_to_vmem [thread:$0]  %s194_s0, 128, %s19_s16, [#allocation4]  }
   0xd   :  { %s121_s20 = scalar_lea.vmem %s29_s14, 16  ;;  %p126_p6 = scmp.lt.s32.totalorder %s29_s14, %s29_s14 }
   0xe   :  { %p122_p5 = scmp.ne.s32.totalorder %s29_s14, %s121_s20  ;;  %p127_p7 = scmp.lt.s32.totalorder %s121_s20, %s121_s20 }
  0x10   :  { %p128_p8 = por %p127_p7, %p126_p6 }
  0x12   :  { %p129_p9 = pnand %p128_p8, %p122_p5 }
  0x14   :  { %132 = shalt.err (!%p129_p9)
}
  0x15   :  { %s160_s1 = smov [#allocation7]  }
  0x16   :  { %31 = dma.vmem_to_smem %s29_s14, 16, %s160_s1, [#allocation6]  }
  0x17   :  { %153 = dma.done.wait [#allocation4], 128  }
  0x18   :  { %154 = vsyncadd [#allocation4], 4294967168 }
  0x19   :  { %155 = dma.done.wait [#allocation6], 16  }
  0x1a   :  { %156 = vsyncadd [#allocation6], 4294967280 }
  0x1b   :  { %40 = sfence }
  0x1c   :  { %s42_s21 = sld [smem:[#allocation7]]  ;;  %v41_v0 = vld [vmem:[#allocation3] sm:$0x1f]  ;;  %v46_v2 = vstv %s196_s2  ;;  %s161_s27 = smov [#allocation8]   ;;  %vm76_vm0 = vcmask 57344  }
  0x1d   :  { %s94_s22 = sld [smem:[#allocation7 + $0x1]]  ;;  %s84_s28 = sshll.u32 %s161_s27, 4  ;;  %s85_s28 = int_to_ptr.vmem [resolvable:$true] %s84_s28 }
  0x1e   :  { %s95_s23 = sld [smem:[#allocation7 + $0x2]]  ;;  %s133_s2 = scalar_lea.vmem %s85_s28, 16 }
  0x1f   :  { %s96_s24 = sld [smem:[#allocation7 + $0x3]]  ;;  %p134_p10 = scmp.ne.s32.totalorder %s85_s28, %s133_s2 }
  0x20   :  { %s97_s0 = sld [smem:[#allocation7 + $0x4]]  ;;  %s137_s29 = scalar_lea.vmem %s85_s28, 32 }
  0x21   :  { %p138_p11 = scmp.lt.s32.totalorder %s85_s28, %s85_s28  ;;  %p139_p12 = scmp.lt.s32.totalorder %s137_s29, %s133_s2 }
  0x22   :  { %v43_v1 = vstv %s42_s21 }
  0x23   :  { %v44_v3 = vmul.f32 %v43_v1, %v41_v0  ;;  %v49_v4 = vstv %s94_s22  ;;  %p140_p13 = por %p139_p12, %p138_p11 }
  0x24   :  { %v50_v5 = vmul.f32 %v49_v4, %v41_v0  ;;  %v56_v6 = vstv %s95_s23 }
  0x25   :  { %v47_v7 = vadd.f32 %v46_v2, %v44_v3  ;;  %v57_v8 = vmul.f32 %v56_v6, %v41_v0  ;;  %v63_v9 = vstv %s96_s24  ;;  %p141_p0 = pnand %p140_p13, %p134_p10 }
  0x26   :  { %v52_v10 = vrot.slane %v50_v5, 1  ;;  %v64_v11 = vmul.f32 %v63_v9, %v41_v0  ;;  %v70_v12 = vstv %s97_s0 }
  0x27   :  { %v59_v13 = vrot.slane %v57_v8, 2  ;;  %v71_v14 = vmul.f32 %v70_v12, %v41_v0 }
  0x28   :  { %v54_v15 = vadd.f32 %v52_v10, %v47_v7  ;;  %v66_v16 = vrot.slane %v64_v11, 3 }
  0x29   :  { %v73_v18 = vrot.slane %v71_v14, 4 }
  0x2a   :  { %v61_v17 = vadd.f32 %v59_v13, %v54_v15 }
  0x2c   :  { %v68_v19 = vadd.f32 %v66_v16, %v61_v17 }
  0x2e   :  { %v75_v20 = vadd.f32 %v73_v18, %v68_v19 }
  0x30   :  { %77 = vst.msk [vmem:[#allocation8] sm:$0x1] %vm76_vm0, %v75_v20 }
  0x31   :  { %144 = shalt.err (!%p141_p0)
}
  0x32   :  { %87 = dma.vmem_to_hbm [thread:$0]  %s85_s28, 16, %s197_s3, [#allocation5]  }
  0x33   :  { %157 = dma.done.wait [#allocation5], 16  }
  0x34   :  { %158 = vsyncadd [#allocation5], 4294967280 }
  0x35   :  { %91 = vsyncpa [#allocation4], 1 }
  0x36   :  { %92 = vsyncpa [#allocation5], 1 }
  0x37   :  { %93 = vsyncpa [#allocation6], 1 }

</bundles_post_ra>
